<compile_context>
chip_gen: v5e
topology: v5e:2x2
jax: 0.10.0
libtpu: 0.0.40
codegen_flags: <defaults>
</compile_context>

<pallas_src>
import functools

import jax
import jax.numpy as jnp
from jax.experimental import pallas as pl
from jax.experimental.pallas import tpu as pltpu


def _level_configs(h, w, num_levels, pool_type):
    """Static (kernel_size, n_h, n_w, pool) per pyramid level."""
    levels = []
    for i in range(num_levels):
        k = h // (2 ** i)  # PyTorch uses h only (square kernel), even if h != w
        if k < 1:
            raise ValueError(
                f"num_levels={num_levels} too deep for h={h} (kernel size would be 0)")
        n_h = (h - k) // k + 1
        n_w = (w - k) // k + 1
        if n_h < 1 or n_w < 1:
            raise ValueError(f"kernel size {k} larger than input ({h}x{w})")
        if pool_type == "max_pool":
            pool = "max"
        elif pool_type == "avg_pool":
            pool = "avg"
        elif pool_type == "mix_pool":
            pool = "avg" if i == 0 else "max"
        else:
            raise NotImplementedError(
                "Currently SPP only supports max, avg and mix _pool")
        levels.append((k, n_h, n_w, pool))
    return tuple(levels)


def _make_spp_kernel(levels):
    """Fused kernel: computes every pyramid level from one VMEM-resident tile."""

    def kernel(x_ref, *o_refs):
        b_tile, c = x_ref.shape[0], x_ref.shape[1]
        for (k, n_h, n_w, pool), o_ref in zip(levels, o_refs):
            bins = n_h * n_w
            inv = 1.0 / float(k * k)
            lane_id = jax.lax.broadcasted_iota(jnp.int32, (b_tile, c, bins), 2)
            if pool == "max":
                acc = jnp.full((b_tile, c, bins), -jnp.inf, dtype=jnp.float32)
            else:
                acc = jnp.zeros((b_tile, c, bins), dtype=jnp.float32)

            for oi in range(n_h):
                # One contiguous band of window-rows: (B, c, k, n_w*k).
                band = x_ref[:, :, oi * k:(oi + 1) * k, :n_w * k].astype(jnp.float32)
                if pool == "max":
                    rows = jnp.max(band, axis=2)          # (B, c, n_w*k)
                else:
                    rows = jnp.sum(band, axis=2)
                for oj in range(n_w):
                    seg = rows[:, :, oj * k:(oj + 1) * k]  # (B, c, k)
                    idx = oi * n_w + oj
                    if pool == "max":
                        v = jnp.max(seg, axis=-1, keepdims=True)        # (B, c, 1)
                        acc = jnp.maximum(
                            acc, jnp.where(lane_id == idx, v, -jnp.inf))
                    else:
                        v = jnp.sum(seg, axis=-1, keepdims=True) * inv  # (B, c, 1)
                        acc = acc + jnp.where(lane_id == idx, v, 0.0)

            # Single dense store per level (channel-major layout).
            o_ref[...] = acc.astype(o_ref.dtype)

    return kernel


def _choose_batch_tile(bs, per_batch_bytes, budget_bytes=2 * 1024 * 1024):
    """Largest divisor of bs fitting the VMEM budget, keeping >=2 grid steps."""
    max_by_budget = max(1, int(budget_bytes // max(per_batch_bytes, 1)))
    cap = bs if bs < 2 else max(1, bs // 2)  # >=2 steps -> both TCs busy on v7x
    limit = max(1, min(bs, cap, max_by_budget))
    b_tile = 1
    for d in range(1, limit + 1):
        if bs % d == 0:
            b_tile = d
    return b_tile


@functools.partial(jax.jit, static_argnames=("num_levels", "pool_type"))
def spp_layer(x, num_levels, pool_type="max_pool"):
    """Pallas-backed SPPLayer.forward. x: (bs, c, h, w)."""
    bs, c, h, w = x.shape
    levels = _level_configs(h, w, num_levels, pool_type)
    b_tile = _choose_batch_tile(bs, c * h * w * x.dtype.itemsize)
    grid = (bs // b_tile,)

    out_shapes = tuple(
        jax.ShapeDtypeStruct((bs, c, n_h * n_w), x.dtype)
        for (_, n_h, n_w, _) in levels)
    out_specs = tuple(
        pl.BlockSpec((b_tile, c, n_h * n_w), lambda b: (b, 0, 0))
        for (_, n_h, n_w, _) in levels)
    in_specs = [pl.BlockSpec((b_tile, c, h, w), lambda b: (b, 0, 0, 0))]

    outs = pl.pallas_call(
        _make_spp_kernel(levels),
        out_shape=out_shapes,
        grid=grid,
        in_specs=in_specs,
        out_specs=out_specs,
        compiler_params=pltpu.CompilerParams(
            dimension_semantics=("parallel",),
            vmem_limit_bytes=32 * 1024 * 1024,
        ),
    )(x)
    if not isinstance(outs, (list, tuple)):
        outs = (outs,)

    # (bs, c, n_h*n_w) -> (bs, c*n_h*n_w) is a free contiguous flatten and
    # already matches torch's `.view(bs, -1)` ordering; concat over levels.
    return jnp.concatenate([o.reshape(bs, -1) for o in outs], axis=-1)


def _spp_reference(x, num_levels, pool_type="max_pool"):
    """Pure-JAX reference (mirrors torch max/avg_pool2d with stride=kernel)."""
    bs, c, h, w = x.shape
    pieces = []
    for i in range(num_levels):
        k = h // (2 ** i)
        n_h = (h - k) // k + 1
        n_w = (w - k) // k + 1
        xc = x[:, :, : n_h * k, : n_w * k].reshape(bs, c, n_h, k, n_w, k)
        if pool_type == "max_pool" or (pool_type == "mix_pool" and i != 0):
            t = jnp.max(xc, axis=(3, 5))
        else:
            t = jnp.mean(xc, axis=(3, 5))
        pieces.append(t.reshape(bs, -1))
    return jnp.concatenate(pieces, axis=-1)


if __name__ == "__main__":
    key = jax.random.PRNGKey(0)
    bs, c, h, w = 2, 4, 16, 16
    num_levels = 3
    x = jax.random.normal(key, (bs, c, h, w), dtype=jnp.float32)

    for pool_type in ("max_pool", "avg_pool", "mix_pool"):
        out = spp_layer(x, num_levels=num_levels, pool_type=pool_type)
        out = jax.block_until_ready(out)
        ref = _spp_reference(x, num_levels, pool_type=pool_type)
        assert out.shape == (bs, c * sum(4 ** i for i in range(num_levels))), out.shape
        assert jnp.allclose(out, ref, atol=1e-5, rtol=1e-5), pool_type

    print("KERNEL_OK")
</pallas_src>

<mosaic_0001>
module attributes {stable_mosaic.version = 11 : i64} {
  func.func @kernel(%arg0: i32, %arg1: memref<1x4x16x16xf32, #tpu.memory_space<vmem>>, %arg2: memref<1x4x1xf32, #tpu.memory_space<vmem>>, %arg3: memref<1x4x4xf32, #tpu.memory_space<vmem>>, %arg4: memref<1x4x16xf32, #tpu.memory_space<vmem>>) attributes {dimension_semantics = [#tpu.dimension_semantics<parallel>], iteration_bounds = array<i64: 2>, scalar_prefetch = 0 : i64, scratch_operands = 0 : i64, tpu.core_type = #tpu.core_type<tc>, window_params = [{transform_indices = @transform_0, window_bounds = array<i64: 1, 4, 16, 16>}, {transform_indices = @transform_1, window_bounds = array<i64: 1, 4, 1>}, {transform_indices = @transform_2, window_bounds = array<i64: 1, 4, 4>}, {transform_indices = @transform_3, window_bounds = array<i64: 1, 4, 16>}]} {
    %0 = tpu.iota {dimensions = array<i32: 2>} : vector<1x4x1xi32>
    %cst = arith.constant 0xFF800000 : f32
    %1 = vector.broadcast %cst : f32 to vector<1x4x1xf32>
    %c0 = arith.constant 0 : index
    %c0_0 = arith.constant 0 : index
    %c0_1 = arith.constant 0 : index
    %c0_2 = arith.constant 0 : index
    %2 = vector.load %arg1[%c0, %c0_0, %c0_1, %c0_2] : memref<1x4x16x16xf32, #tpu.memory_space<vmem>>, vector<1x4x16x16xf32>
    %cst_3 = arith.constant dense<0xFF800000> : vector<1x4x16xf32>
    %3 = vector.multi_reduction <maximumf>, %2, %cst_3 [2] : vector<1x4x16x16xf32> to vector<1x4x16xf32>
    %cst_4 = arith.constant dense<0xFF800000> : vector<1x4xf32>
    %4 = vector.multi_reduction <maximumf>, %3, %cst_4 [2] : vector<1x4x16xf32> to vector<1x4xf32>
    %5 = vector.shape_cast %4 : vector<1x4xf32> to vector<1x4x1xf32>
    %c0_i32 = arith.constant 0 : i32
    %6 = vector.broadcast %c0_i32 : i32 to vector<1x4x1xi32>
    %7 = arith.cmpi eq, %0, %6 : vector<1x4x1xi32>
    %cst_5 = arith.constant 0xFF800000 : f32
    %8 = vector.broadcast %cst_5 : f32 to vector<1x4x1xf32>
    %9 = arith.select %7, %5, %8 : vector<1x4x1xi1>, vector<1x4x1xf32>
    %10 = arith.maximumf %1, %9 : vector<1x4x1xf32>
    %c0_6 = arith.constant 0 : index
    %c0_7 = arith.constant 0 : index
    %c0_8 = arith.constant 0 : index
    %11 = vector.load %arg2[%c0_6, %c0_7, %c0_8] : memref<1x4x1xf32, #tpu.memory_space<vmem>>, vector<1x4x1xf32>
    tpu.vector_store %arg2[%c0_6, %c0_7, %c0_8], %10 {strides = array<i32>} : memref<1x4x1xf32, #tpu.memory_space<vmem>>, vector<1x4x1xf32>,
    %12 = tpu.iota {dimensions = array<i32: 2>} : vector<1x4x4xi32>
    %cst_9 = arith.constant 0xFF800000 : f32
    %13 = vector.broadcast %cst_9 : f32 to vector<1x4x4xf32>
    %c0_10 = arith.constant 0 : index
    %c0_11 = arith.constant 0 : index
    %c0_12 = arith.constant 0 : index
    %c0_13 = arith.constant 0 : index
    %14 = vector.load %arg1[%c0_10, %c0_11, %c0_12, %c0_13] : memref<1x4x16x16xf32, #tpu.memory_space<vmem>>, vector<1x4x8x16xf32>
    %cst_14 = arith.constant dense<0xFF800000> : vector<1x4x16xf32>
    %15 = vector.multi_reduction <maximumf>, %14, %cst_14 [2] : vector<1x4x8x16xf32> to vector<1x4x16xf32>
    %16 = vector.extract_strided_slice %15 {offsets = [0, 0, 0], sizes = [1, 4, 8], strides = [1, 1, 1]} : vector<1x4x16xf32> to vector<1x4x8xf32>
    %cst_15 = arith.constant dense<0xFF800000> : vector<1x4xf32>
    %17 = vector.multi_reduction <maximumf>, %16, %cst_15 [2] : vector<1x4x8xf32> to vector<1x4xf32>
    %18 = vector.shape_cast %17 : vector<1x4xf32> to vector<1x4x1xf32>
    %c0_i32_16 = arith.constant 0 : i32
    %19 = vector.broadcast %c0_i32_16 : i32 to vector<1x4x4xi32>
    %20 = arith.cmpi eq, %12, %19 : vector<1x4x4xi32>
    %cst_17 = arith.constant 0xFF800000 : f32
    %21 = vector.shape_cast %18 : vector<1x4x1xf32> to vector<1x4x1xf32>
    %22 = vector.broadcast %21 : vector<1x4x1xf32> to vector<1x4x4xf32>
    %23 = vector.broadcast %cst_17 : f32 to vector<1x4x4xf32>
    %24 = arith.select %20, %22, %23 : vector<1x4x4xi1>, vector<1x4x4xf32>
    %25 = arith.maximumf %13, %24 : vector<1x4x4xf32>
    %26 = vector.extract_strided_slice %15 {offsets = [0, 0, 8], sizes = [1, 4, 8], strides = [1, 1, 1]} : vector<1x4x16xf32> to vector<1x4x8xf32>
    %cst_18 = arith.constant dense<0xFF800000> : vector<1x4xf32>
    %27 = vector.multi_reduction <maximumf>, %26, %cst_18 [2] : vector<1x4x8xf32> to vector<1x4xf32>
    %28 = vector.shape_cast %27 : vector<1x4xf32> to vector<1x4x1xf32>
    %c1_i32 = arith.constant 1 : i32
    %29 = vector.broadcast %c1_i32 : i32 to vector<1x4x4xi32>
    %30 = arith.cmpi eq, %12, %29 : vector<1x4x4xi32>
    %cst_19 = arith.constant 0xFF800000 : f32
    %31 = vector.shape_cast %28 : vector<1x4x1xf32> to vector<1x4x1xf32>
    %32 = vector.broadcast %31 : vector<1x4x1xf32> to vector<1x4x4xf32>
    %33 = vector.broadcast %cst_19 : f32 to vector<1x4x4xf32>
    %34 = arith.select %30, %32, %33 : vector<1x4x4xi1>, vector<1x4x4xf32>
    %35 = arith.maximumf %25, %34 : vector<1x4x4xf32>
    %c0_20 = arith.constant 0 : index
    %c0_21 = arith.constant 0 : index
    %c8 = arith.constant 8 : index
    %c0_22 = arith.constant 0 : index
    %36 = vector.load %arg1[%c0_20, %c0_21, %c8, %c0_22] : memref<1x4x16x16xf32, #tpu.memory_space<vmem>>, vector<1x4x8x16xf32>
    %cst_23 = arith.constant dense<0xFF800000> : vector<1x4x16xf32>
    %37 = vector.multi_reduction <maximumf>, %36, %cst_23 [2] : vector<1x4x8x16xf32> to vector<1x4x16xf32>
    %38 = vector.extract_strided_slice %37 {offsets = [0, 0, 0], sizes = [1, 4, 8], strides = [1, 1, 1]} : vector<1x4x16xf32> to vector<1x4x8xf32>
    %cst_24 = arith.constant dense<0xFF800000> : vector<1x4xf32>
    %39 = vector.multi_reduction <maximumf>, %38, %cst_24 [2] : vector<1x4x8xf32> to vector<1x4xf32>
    %40 = vector.shape_cast %39 : vector<1x4xf32> to vector<1x4x1xf32>
    %c2_i32 = arith.constant 2 : i32
    %41 = vector.broadcast %c2_i32 : i32 to vector<1x4x4xi32>
    %42 = arith.cmpi eq, %12, %41 : vector<1x4x4xi32>
    %cst_25 = arith.constant 0xFF800000 : f32
    %43 = vector.shape_cast %40 : vector<1x4x1xf32> to vector<1x4x1xf32>
    %44 = vector.broadcast %43 : vector<1x4x1xf32> to vector<1x4x4xf32>
    %45 = vector.broadcast %cst_25 : f32 to vector<1x4x4xf32>
    %46 = arith.select %42, %44, %45 : vector<1x4x4xi1>, vector<1x4x4xf32>
    %47 = arith.maximumf %35, %46 : vector<1x4x4xf32>
    %48 = vector.extract_strided_slice %37 {offsets = [0, 0, 8], sizes = [1, 4, 8], strides = [1, 1, 1]} : vector<1x4x16xf32> to vector<1x4x8xf32>
    %cst_26 = arith.constant dense<0xFF800000> : vector<1x4xf32>
    %49 = vector.multi_reduction <maximumf>, %48, %cst_26 [2] : vector<1x4x8xf32> to vector<1x4xf32>
    %50 = vector.shape_cast %49 : vector<1x4xf32> to vector<1x4x1xf32>
    %c3_i32 = arith.constant 3 : i32
    %51 = vector.broadcast %c3_i32 : i32 to vector<1x4x4xi32>
    %52 = arith.cmpi eq, %12, %51 : vector<1x4x4xi32>
    %cst_27 = arith.constant 0xFF800000 : f32
    %53 = vector.shape_cast %50 : vector<1x4x1xf32> to vector<1x4x1xf32>
    %54 = vector.broadcast %53 : vector<1x4x1xf32> to vector<1x4x4xf32>
    %55 = vector.broadcast %cst_27 : f32 to vector<1x4x4xf32>
    %56 = arith.select %52, %54, %55 : vector<1x4x4xi1>, vector<1x4x4xf32>
    %57 = arith.maximumf %47, %56 : vector<1x4x4xf32>
    %c0_28 = arith.constant 0 : index
    %c0_29 = arith.constant 0 : index
    %c0_30 = arith.constant 0 : index
    %58 = vector.load %arg3[%c0_28, %c0_29, %c0_30] : memref<1x4x4xf32, #tpu.memory_space<vmem>>, vector<1x4x4xf32>
    tpu.vector_store %arg3[%c0_28, %c0_29, %c0_30], %57 {strides = array<i32>} : memref<1x4x4xf32, #tpu.memory_space<vmem>>, vector<1x4x4xf32>,
    %59 = tpu.iota {dimensions = array<i32: 2>} : vector<1x4x16xi32>
    %cst_31 = arith.constant 0xFF800000 : f32
    %60 = vector.broadcast %cst_31 : f32 to vector<1x4x16xf32>
    %c0_32 = arith.constant 0 : index
    %c0_33 = arith.constant 0 : index
    %c0_34 = arith.constant 0 : index
    %c0_35 = arith.constant 0 : index
    %61 = vector.load %arg1[%c0_32, %c0_33, %c0_34, %c0_35] : memref<1x4x16x16xf32, #tpu.memory_space<vmem>>, vector<1x4x4x16xf32>
    %cst_36 = arith.constant dense<0xFF800000> : vector<1x4x16xf32>
    %62 = vector.multi_reduction <maximumf>, %61, %cst_36 [2] : vector<1x4x4x16xf32> to vector<1x4x16xf32>
    %63 = vector.extract_strided_slice %62 {offsets = [0, 0, 0], sizes = [1, 4, 4], strides = [1, 1, 1]} : vector<1x4x16xf32> to vector<1x4x4xf32>
    %cst_37 = arith.constant dense<0xFF800000> : vector<1x4xf32>
    %64 = vector.multi_reduction <maximumf>, %63, %cst_37 [2] : vector<1x4x4xf32> to vector<1x4xf32>
    %65 = vector.shape_cast %64 : vector<1x4xf32> to vector<1x4x1xf32>
    %c0_i32_38 = arith.constant 0 : i32
    %66 = vector.broadcast %c0_i32_38 : i32 to vector<1x4x16xi32>
    %67 = arith.cmpi eq, %59, %66 : vector<1x4x16xi32>
    %cst_39 = arith.constant 0xFF800000 : f32
    %68 = vector.shape_cast %65 : vector<1x4x1xf32> to vector<1x4x1xf32>
    %69 = vector.broadcast %68 : vector<1x4x1xf32> to vector<1x4x16xf32>
    %70 = vector.broadcast %cst_39 : f32 to vector<1x4x16xf32>
    %71 = arith.select %67, %69, %70 : vector<1x4x16xi1>, vector<1x4x16xf32>
    %72 = arith.maximumf %60, %71 : vector<1x4x16xf32>
    %73 = vector.extract_strided_slice %62 {offsets = [0, 0, 4], sizes = [1, 4, 4], strides = [1, 1, 1]} : vector<1x4x16xf32> to vector<1x4x4xf32>
    %cst_40 = arith.constant dense<0xFF800000> : vector<1x4xf32>
    %74 = vector.multi_reduction <maximumf>, %73, %cst_40 [2] : vector<1x4x4xf32> to vector<1x4xf32>
    %75 = vector.shape_cast %74 : vector<1x4xf32> to vector<1x4x1xf32>
    %c1_i32_41 = arith.constant 1 : i32
    %76 = vector.broadcast %c1_i32_41 : i32 to vector<1x4x16xi32>
    %77 = arith.cmpi eq, %59, %76 : vector<1x4x16xi32>
    %cst_42 = arith.constant 0xFF800000 : f32
    %78 = vector.shape_cast %75 : vector<1x4x1xf32> to vector<1x4x1xf32>
    %79 = vector.broadcast %78 : vector<1x4x1xf32> to vector<1x4x16xf32>
    %80 = vector.broadcast %cst_42 : f32 to vector<1x4x16xf32>
    %81 = arith.select %77, %79, %80 : vector<1x4x16xi1>, vector<1x4x16xf32>
    %82 = arith.maximumf %72, %81 : vector<1x4x16xf32>
    %83 = vector.extract_strided_slice %62 {offsets = [0, 0, 8], sizes = [1, 4, 4], strides = [1, 1, 1]} : vector<1x4x16xf32> to vector<1x4x4xf32>
    %cst_43 = arith.constant dense<0xFF800000> : vector<1x4xf32>
    %84 = vector.multi_reduction <maximumf>, %83, %cst_43 [2] : vector<1x4x4xf32> to vector<1x4xf32>
    %85 = vector.shape_cast %84 : vector<1x4xf32> to vector<1x4x1xf32>
    %c2_i32_44 = arith.constant 2 : i32
    %86 = vector.broadcast %c2_i32_44 : i32 to vector<1x4x16xi32>
    %87 = arith.cmpi eq, %59, %86 : vector<1x4x16xi32>
    %cst_45 = arith.constant 0xFF800000 : f32
    %88 = vector.shape_cast %85 : vector<1x4x1xf32> to vector<1x4x1xf32>
    %89 = vector.broadcast %88 : vector<1x4x1xf32> to vector<1x4x16xf32>
    %90 = vector.broadcast %cst_45 : f32 to vector<1x4x16xf32>
    %91 = arith.select %87, %89, %90 : vector<1x4x16xi1>, vector<1x4x16xf32>
    %92 = arith.maximumf %82, %91 : vector<1x4x16xf32>
    %93 = vector.extract_strided_slice %62 {offsets = [0, 0, 12], sizes = [1, 4, 4], strides = [1, 1, 1]} : vector<1x4x16xf32> to vector<1x4x4xf32>
    %cst_46 = arith.constant dense<0xFF800000> : vector<1x4xf32>
    %94 = vector.multi_reduction <maximumf>, %93, %cst_46 [2] : vector<1x4x4xf32> to vector<1x4xf32>
    %95 = vector.shape_cast %94 : vector<1x4xf32> to vector<1x4x1xf32>
    %c3_i32_47 = arith.constant 3 : i32
    %96 = vector.broadcast %c3_i32_47 : i32 to vector<1x4x16xi32>
    %97 = arith.cmpi eq, %59, %96 : vector<1x4x16xi32>
    %cst_48 = arith.constant 0xFF800000 : f32
    %98 = vector.shape_cast %95 : vector<1x4x1xf32> to vector<1x4x1xf32>
    %99 = vector.broadcast %98 : vector<1x4x1xf32> to vector<1x4x16xf32>
    %100 = vector.broadcast %cst_48 : f32 to vector<1x4x16xf32>
    %101 = arith.select %97, %99, %100 : vector<1x4x16xi1>, vector<1x4x16xf32>
    %102 = arith.maximumf %92, %101 : vector<1x4x16xf32>
    %c0_49 = arith.constant 0 : index
    %c0_50 = arith.constant 0 : index
    %c4 = arith.constant 4 : index
    %c0_51 = arith.constant 0 : index
    %103 = vector.load %arg1[%c0_49, %c0_50, %c4, %c0_51] : memref<1x4x16x16xf32, #tpu.memory_space<vmem>>, vector<1x4x4x16xf32>
    %cst_52 = arith.constant dense<0xFF800000> : vector<1x4x16xf32>
    %104 = vector.multi_reduction <maximumf>, %103, %cst_52 [2] : vector<1x4x4x16xf32> to vector<1x4x16xf32>
    %105 = vector.extract_strided_slice %104 {offsets = [0, 0, 0], sizes = [1, 4, 4], strides = [1, 1, 1]} : vector<1x4x16xf32> to vector<1x4x4xf32>
    %cst_53 = arith.constant dense<0xFF800000> : vector<1x4xf32>
    %106 = vector.multi_reduction <maximumf>, %105, %cst_53 [2] : vector<1x4x4xf32> to vector<1x4xf32>
    %107 = vector.shape_cast %106 : vector<1x4xf32> to vector<1x4x1xf32>
    %c4_i32 = arith.constant 4 : i32
    %108 = vector.broadcast %c4_i32 : i32 to vector<1x4x16xi32>
    %109 = arith.cmpi eq, %59, %108 : vector<1x4x16xi32>
    %cst_54 = arith.constant 0xFF800000 : f32
    %110 = vector.shape_cast %107 : vector<1x4x1xf32> to vector<1x4x1xf32>
    %111 = vector.broadcast %110 : vector<1x4x1xf32> to vector<1x4x16xf32>
    %112 = vector.broadcast %cst_54 : f32 to vector<1x4x16xf32>
    %113 = arith.select %109, %111, %112 : vector<1x4x16xi1>, vector<1x4x16xf32>
    %114 = arith.maximumf %102, %113 : vector<1x4x16xf32>
    %115 = vector.extract_strided_slice %104 {offsets = [0, 0, 4], sizes = [1, 4, 4], strides = [1, 1, 1]} : vector<1x4x16xf32> to vector<1x4x4xf32>
    %cst_55 = arith.constant dense<0xFF800000> : vector<1x4xf32>
    %116 = vector.multi_reduction <maximumf>, %115, %cst_55 [2] : vector<1x4x4xf32> to vector<1x4xf32>
    %117 = vector.shape_cast %116 : vector<1x4xf32> to vector<1x4x1xf32>
    %c5_i32 = arith.constant 5 : i32
    %118 = vector.broadcast %c5_i32 : i32 to vector<1x4x16xi32>
    %119 = arith.cmpi eq, %59, %118 : vector<1x4x16xi32>
    %cst_56 = arith.constant 0xFF800000 : f32
    %120 = vector.shape_cast %117 : vector<1x4x1xf32> to vector<1x4x1xf32>
    %121 = vector.broadcast %120 : vector<1x4x1xf32> to vector<1x4x16xf32>
    %122 = vector.broadcast %cst_56 : f32 to vector<1x4x16xf32>
    %123 = arith.select %119, %121, %122 : vector<1x4x16xi1>, vector<1x4x16xf32>
    %124 = arith.maximumf %114, %123 : vector<1x4x16xf32>
    %125 = vector.extract_strided_slice %104 {offsets = [0, 0, 8], sizes = [1, 4, 4], strides = [1, 1, 1]} : vector<1x4x16xf32> to vector<1x4x4xf32>
    %cst_57 = arith.constant dense<0xFF800000> : vector<1x4xf32>
    %126 = vector.multi_reduction <maximumf>, %125, %cst_57 [2] : vector<1x4x4xf32> to vector<1x4xf32>
    %127 = vector.shape_cast %126 : vector<1x4xf32> to vector<1x4x1xf32>
    %c6_i32 = arith.constant 6 : i32
    %128 = vector.broadcast %c6_i32 : i32 to vector<1x4x16xi32>
    %129 = arith.cmpi eq, %59, %128 : vector<1x4x16xi32>
    %cst_58 = arith.constant 0xFF800000 : f32
    %130 = vector.shape_cast %127 : vector<1x4x1xf32> to vector<1x4x1xf32>
    %131 = vector.broadcast %130 : vector<1x4x1xf32> to vector<1x4x16xf32>
    %132 = vector.broadcast %cst_58 : f32 to vector<1x4x16xf32>
    %133 = arith.select %129, %131, %132 : vector<1x4x16xi1>, vector<1x4x16xf32>
    %134 = arith.maximumf %124, %133 : vector<1x4x16xf32>
    %135 = vector.extract_strided_slice %104 {offsets = [0, 0, 12], sizes = [1, 4, 4], strides = [1, 1, 1]} : vector<1x4x16xf32> to vector<1x4x4xf32>
    %cst_59 = arith.constant dense<0xFF800000> : vector<1x4xf32>
    %136 = vector.multi_reduction <maximumf>, %135, %cst_59 [2] : vector<1x4x4xf32> to vector<1x4xf32>
    %137 = vector.shape_cast %136 : vector<1x4xf32> to vector<1x4x1xf32>
    %c7_i32 = arith.constant 7 : i32
    %138 = vector.broadcast %c7_i32 : i32 to vector<1x4x16xi32>
    %139 = arith.cmpi eq, %59, %138 : vector<1x4x16xi32>
    %cst_60 = arith.constant 0xFF800000 : f32
    %140 = vector.shape_cast %137 : vector<1x4x1xf32> to vector<1x4x1xf32>
    %141 = vector.broadcast %140 : vector<1x4x1xf32> to vector<1x4x16xf32>
    %142 = vector.broadcast %cst_60 : f32 to vector<1x4x16xf32>
    %143 = arith.select %139, %141, %142 : vector<1x4x16xi1>, vector<1x4x16xf32>
    %144 = arith.maximumf %134, %143 : vector<1x4x16xf32>
    %c0_61 = arith.constant 0 : index
    %c0_62 = arith.constant 0 : index
    %c8_63 = arith.constant 8 : index
    %c0_64 = arith.constant 0 : index
    %145 = vector.load %arg1[%c0_61, %c0_62, %c8_63, %c0_64] : memref<1x4x16x16xf32, #tpu.memory_space<vmem>>, vector<1x4x4x16xf32>
    %cst_65 = arith.constant dense<0xFF800000> : vector<1x4x16xf32>
    %146 = vector.multi_reduction <maximumf>, %145, %cst_65 [2] : vector<1x4x4x16xf32> to vector<1x4x16xf32>
    %147 = vector.extract_strided_slice %146 {offsets = [0, 0, 0], sizes = [1, 4, 4], strides = [1, 1, 1]} : vector<1x4x16xf32> to vector<1x4x4xf32>
    %cst_66 = arith.constant dense<0xFF800000> : vector<1x4xf32>
    %148 = vector.multi_reduction <maximumf>, %147, %cst_66 [2] : vector<1x4x4xf32> to vector<1x4xf32>
    %149 = vector.shape_cast %148 : vector<1x4xf32> to vector<1x4x1xf32>
    %c8_i32 = arith.constant 8 : i32
    %150 = vector.broadcast %c8_i32 : i32 to vector<1x4x16xi32>
    %151 = arith.cmpi eq, %59, %150 : vector<1x4x16xi32>
    %cst_67 = arith.constant 0xFF800000 : f32
    %152 = vector.shape_cast %149 : vector<1x4x1xf32> to vector<1x4x1xf32>
    %153 = vector.broadcast %152 : vector<1x4x1xf32> to vector<1x4x16xf32>
    %154 = vector.broadcast %cst_67 : f32 to vector<1x4x16xf32>
    %155 = arith.select %151, %153, %154 : vector<1x4x16xi1>, vector<1x4x16xf32>
    %156 = arith.maximumf %144, %155 : vector<1x4x16xf32>
    %157 = vector.extract_strided_slice %146 {offsets = [0, 0, 4], sizes = [1, 4, 4], strides = [1, 1, 1]} : vector<1x4x16xf32> to vector<1x4x4xf32>
    %cst_68 = arith.constant dense<0xFF800000> : vector<1x4xf32>
    %158 = vector.multi_reduction <maximumf>, %157, %cst_68 [2] : vector<1x4x4xf32> to vector<1x4xf32>
    %159 = vector.shape_cast %158 : vector<1x4xf32> to vector<1x4x1xf32>
    %c9_i32 = arith.constant 9 : i32
    %160 = vector.broadcast %c9_i32 : i32 to vector<1x4x16xi32>
    %161 = arith.cmpi eq, %59, %160 : vector<1x4x16xi32>
    %cst_69 = arith.constant 0xFF800000 : f32
    %162 = vector.shape_cast %159 : vector<1x4x1xf32> to vector<1x4x1xf32>
    %163 = vector.broadcast %162 : vector<1x4x1xf32> to vector<1x4x16xf32>
    %164 = vector.broadcast %cst_69 : f32 to vector<1x4x16xf32>
    %165 = arith.select %161, %163, %164 : vector<1x4x16xi1>, vector<1x4x16xf32>
    %166 = arith.maximumf %156, %165 : vector<1x4x16xf32>
    %167 = vector.extract_strided_slice %146 {offsets = [0, 0, 8], sizes = [1, 4, 4], strides = [1, 1, 1]} : vector<1x4x16xf32> to vector<1x4x4xf32>
    %cst_70 = arith.constant dense<0xFF800000> : vector<1x4xf32>
    %168 = vector.multi_reduction <maximumf>, %167, %cst_70 [2] : vector<1x4x4xf32> to vector<1x4xf32>
    %169 = vector.shape_cast %168 : vector<1x4xf32> to vector<1x4x1xf32>
    %c10_i32 = arith.constant 10 : i32
    %170 = vector.broadcast %c10_i32 : i32 to vector<1x4x16xi32>
    %171 = arith.cmpi eq, %59, %170 : vector<1x4x16xi32>
    %cst_71 = arith.constant 0xFF800000 : f32
    %172 = vector.shape_cast %169 : vector<1x4x1xf32> to vector<1x4x1xf32>
    %173 = vector.broadcast %172 : vector<1x4x1xf32> to vector<1x4x16xf32>
    %174 = vector.broadcast %cst_71 : f32 to vector<1x4x16xf32>
    %175 = arith.select %171, %173, %174 : vector<1x4x16xi1>, vector<1x4x16xf32>
    %176 = arith.maximumf %166, %175 : vector<1x4x16xf32>
    %177 = vector.extract_strided_slice %146 {offsets = [0, 0, 12], sizes = [1, 4, 4], strides = [1, 1, 1]} : vector<1x4x16xf32> to vector<1x4x4xf32>
    %cst_72 = arith.constant dense<0xFF800000> : vector<1x4xf32>
    %178 = vector.multi_reduction <maximumf>, %177, %cst_72 [2] : vector<1x4x4xf32> to vector<1x4xf32>
    %179 = vector.shape_cast %178 : vector<1x4xf32> to vector<1x4x1xf32>
    %c11_i32 = arith.constant 11 : i32
    %180 = vector.broadcast %c11_i32 : i32 to vector<1x4x16xi32>
    %181 = arith.cmpi eq, %59, %180 : vector<1x4x16xi32>
    %cst_73 = arith.constant 0xFF800000 : f32
    %182 = vector.shape_cast %179 : vector<1x4x1xf32> to vector<1x4x1xf32>
    %183 = vector.broadcast %182 : vector<1x4x1xf32> to vector<1x4x16xf32>
    %184 = vector.broadcast %cst_73 : f32 to vector<1x4x16xf32>
    %185 = arith.select %181, %183, %184 : vector<1x4x16xi1>, vector<1x4x16xf32>
    %186 = arith.maximumf %176, %185 : vector<1x4x16xf32>
    %c0_74 = arith.constant 0 : index
    %c0_75 = arith.constant 0 : index
    %c12 = arith.constant 12 : index
    %c0_76 = arith.constant 0 : index
    %187 = vector.load %arg1[%c0_74, %c0_75, %c12, %c0_76] : memref<1x4x16x16xf32, #tpu.memory_space<vmem>>, vector<1x4x4x16xf32>
    %cst_77 = arith.constant dense<0xFF800000> : vector<1x4x16xf32>
    %188 = vector.multi_reduction <maximumf>, %187, %cst_77 [2] : vector<1x4x4x16xf32> to vector<1x4x16xf32>
    %189 = vector.extract_strided_slice %188 {offsets = [0, 0, 0], sizes = [1, 4, 4], strides = [1, 1, 1]} : vector<1x4x16xf32> to vector<1x4x4xf32>
    %cst_78 = arith.constant dense<0xFF800000> : vector<1x4xf32>
    %190 = vector.multi_reduction <maximumf>, %189, %cst_78 [2] : vector<1x4x4xf32> to vector<1x4xf32>
    %191 = vector.shape_cast %190 : vector<1x4xf32> to vector<1x4x1xf32>
    %c12_i32 = arith.constant 12 : i32
    %192 = vector.broadcast %c12_i32 : i32 to vector<1x4x16xi32>
    %193 = arith.cmpi eq, %59, %192 : vector<1x4x16xi32>
    %cst_79 = arith.constant 0xFF800000 : f32
    %194 = vector.shape_cast %191 : vector<1x4x1xf32> to vector<1x4x1xf32>
    %195 = vector.broadcast %194 : vector<1x4x1xf32> to vector<1x4x16xf32>
    %196 = vector.broadcast %cst_79 : f32 to vector<1x4x16xf32>
    %197 = arith.select %193, %195, %196 : vector<1x4x16xi1>, vector<1x4x16xf32>
    %198 = arith.maximumf %186, %197 : vector<1x4x16xf32>
    %199 = vector.extract_strided_slice %188 {offsets = [0, 0, 4], sizes = [1, 4, 4], strides = [1, 1, 1]} : vector<1x4x16xf32> to vector<1x4x4xf32>
    %cst_80 = arith.constant dense<0xFF800000> : vector<1x4xf32>
    %200 = vector.multi_reduction <maximumf>, %199, %cst_80 [2] : vector<1x4x4xf32> to vector<1x4xf32>
    %201 = vector.shape_cast %200 : vector<1x4xf32> to vector<1x4x1xf32>
    %c13_i32 = arith.constant 13 : i32
    %202 = vector.broadcast %c13_i32 : i32 to vector<1x4x16xi32>
    %203 = arith.cmpi eq, %59, %202 : vector<1x4x16xi32>
    %cst_81 = arith.constant 0xFF800000 : f32
    %204 = vector.shape_cast %201 : vector<1x4x1xf32> to vector<1x4x1xf32>
    %205 = vector.broadcast %204 : vector<1x4x1xf32> to vector<1x4x16xf32>
    %206 = vector.broadcast %cst_81 : f32 to vector<1x4x16xf32>
    %207 = arith.select %203, %205, %206 : vector<1x4x16xi1>, vector<1x4x16xf32>
    %208 = arith.maximumf %198, %207 : vector<1x4x16xf32>
    %209 = vector.extract_strided_slice %188 {offsets = [0, 0, 8], sizes = [1, 4, 4], strides = [1, 1, 1]} : vector<1x4x16xf32> to vector<1x4x4xf32>
    %cst_82 = arith.constant dense<0xFF800000> : vector<1x4xf32>
    %210 = vector.multi_reduction <maximumf>, %209, %cst_82 [2] : vector<1x4x4xf32> to vector<1x4xf32>
    %211 = vector.shape_cast %210 : vector<1x4xf32> to vector<1x4x1xf32>
    %c14_i32 = arith.constant 14 : i32
    %212 = vector.broadcast %c14_i32 : i32 to vector<1x4x16xi32>
    %213 = arith.cmpi eq, %59, %212 : vector<1x4x16xi32>
    %cst_83 = arith.constant 0xFF800000 : f32
    %214 = vector.shape_cast %211 : vector<1x4x1xf32> to vector<1x4x1xf32>
    %215 = vector.broadcast %214 : vector<1x4x1xf32> to vector<1x4x16xf32>
    %216 = vector.broadcast %cst_83 : f32 to vector<1x4x16xf32>
    %217 = arith.select %213, %215, %216 : vector<1x4x16xi1>, vector<1x4x16xf32>
    %218 = arith.maximumf %208, %217 : vector<1x4x16xf32>
    %219 = vector.extract_strided_slice %188 {offsets = [0, 0, 12], sizes = [1, 4, 4], strides = [1, 1, 1]} : vector<1x4x16xf32> to vector<1x4x4xf32>
    %cst_84 = arith.constant dense<0xFF800000> : vector<1x4xf32>
    %220 = vector.multi_reduction <maximumf>, %219, %cst_84 [2] : vector<1x4x4xf32> to vector<1x4xf32>
    %221 = vector.shape_cast %220 : vector<1x4xf32> to vector<1x4x1xf32>
    %c15_i32 = arith.constant 15 : i32
    %222 = vector.broadcast %c15_i32 : i32 to vector<1x4x16xi32>
    %223 = arith.cmpi eq, %59, %222 : vector<1x4x16xi32>
    %cst_85 = arith.constant 0xFF800000 : f32
    %224 = vector.shape_cast %221 : vector<1x4x1xf32> to vector<1x4x1xf32>
    %225 = vector.broadcast %224 : vector<1x4x1xf32> to vector<1x4x16xf32>
    %226 = vector.broadcast %cst_85 : f32 to vector<1x4x16xf32>
    %227 = arith.select %223, %225, %226 : vector<1x4x16xi1>, vector<1x4x16xf32>
    %228 = arith.maximumf %218, %227 : vector<1x4x16xf32>
    %c0_86 = arith.constant 0 : index
    %c0_87 = arith.constant 0 : index
    %c0_88 = arith.constant 0 : index
    %229 = vector.load %arg4[%c0_86, %c0_87, %c0_88] : memref<1x4x16xf32, #tpu.memory_space<vmem>>, vector<1x4x16xf32>
    tpu.vector_store %arg4[%c0_86, %c0_87, %c0_88], %228 {strides = array<i32>} : memref<1x4x16xf32, #tpu.memory_space<vmem>>, vector<1x4x16xf32>,
    return
  }
  func.func @transform_0(%arg0: i32) -> (i32, i32, i32, i32) {
    %c0_i32 = arith.constant 0 : i32
    %c0_i32_0 = arith.constant 0 : i32
    %c0_i32_1 = arith.constant 0 : i32
    %c0_i32_2 = arith.constant 0 : i32
    return %arg0, %c0_i32, %c0_i32_0, %c0_i32_1 : i32, i32, i32, i32
  }
  func.func @transform_1(%arg0: i32) -> (i32, i32, i32) {
    %c0_i32 = arith.constant 0 : i32
    %c0_i32_0 = arith.constant 0 : i32
    %c0_i32_1 = arith.constant 0 : i32
    return %arg0, %c0_i32, %c0_i32_0 : i32, i32, i32
  }
  func.func @transform_2(%arg0: i32) -> (i32, i32, i32) {
    %c0_i32 = arith.constant 0 : i32
    %c0_i32_0 = arith.constant 0 : i32
    %c0_i32_1 = arith.constant 0 : i32
    return %arg0, %c0_i32, %c0_i32_0 : i32, i32, i32
  }
  func.func @transform_3(%arg0: i32) -> (i32, i32, i32) {
    %c0_i32 = arith.constant 0 : i32
    %c0_i32_0 = arith.constant 0 : i32
    %c0_i32_1 = arith.constant 0 : i32
    return %arg0, %c0_i32, %c0_i32_0 : i32, i32, i32
  }
}

</mosaic_0001>

<bundles_post_ra>
// kernel: spp_layer.1
= control target key start
LH: loop header
LB: loop body
LE: loop exit
PB: predicated region body
PF: predicated region fallthrough
CT: control target
= control target key end

     0   :  { %9 = vsyncpa [#allocation3], 0  ;;  %s1169_s0 = inlined_call_operand.hbm [shape: f32[2,4,16,16], index: 0, kind: input, shape index: {}]   ;;  %s1170_s1 = inlined_call_operand.vmem [shape: f32[2,4,1], index: 1, kind: output, shape index: {0}]   ;;  %s1171_s2 = inlined_call_operand.vmem [shape: f32[2,4,4], index: 2, kind: output, shape index: {1}]   ;;  %s1172_s3 = inlined_call_operand.vmem [shape: f32[2,4,16], index: 3, kind: output, shape index: {2}]  }
   0x1   :  { %11 = vsyncpa [#allocation3 + $0x1], 0  ;;  %s909_s12 = smov 0   ;;  %s911_s13 = smov 0  }
   0x2   :  { %s913_s14 = smov 0   ;;  %s915_s15 = smov 0  }
   0x3 LB: > { %s928_s16 = sadd.s32 4294967295, %s885_s15   ;;  %s931_s17 = sadd.s32 1, %s885_s15   ;;  %s885_s15 = sphi %s915_s15, %s1179_s15   ;;  %s881_s14 = sphi %s913_s14, %s1178_s14   ;;  %s877_s13 = sphi %s911_s13, %s1177_s13   ;;  %s873_s12 = sphi %s909_s12, %s1176_s12  }
   0x4   : > { %s21_s18 = ssub.s32 %s885_s15, %s931_s17  ;;  %s24_s19 = sadd.s32 1, %s881_s14 }
   0x5   : > { %p22_p0 = scmp.eq.s32.totalorder %s21_s18, 0  ;;  %p31_p1 = scmp.ne.s32.totalorder %s881_s14, %s877_s13 }
   0x6   : > { %p32_p2 = scmp.eq.s32.totalorder %s885_s15, 0  ;;  %p37_p3 = scmp.ne.s32.totalorder %s877_s13, %s873_s12 }
   0x7   : > { %s941_s20 = scalar_select %p22_p0, %s881_s14, %s24_s19  }
   0x8   : > { %p943_p4 = por %p32_p2, %p31_p1  ;;  %p38_p5 = scmp.eq.s32.totalorder %s928_s16, 0 }
   0x9   : > { %p786_p6 = scmp.lt.s32.totalorder %s885_s15, 2  ;;  %s139_s23 = sand.u32 1, %s881_s14  }
   0xa   : > { %p949_p7 = por %p38_p5, %p37_p3  ;;  %s769_s24 = sshll.u32 %s139_s23, 6 }
   0xb   : > { %s779_s25 = sshll.u32 %s885_s15, 6  ;;  %s143_s29 = scalar_lea.vmem [#allocation2], %s769_s24 }
   0xc   : > { %s148_s28 = scalar_lea.hbm %s1169_s0, %s779_s25  ;;  %s151_s30 = sshll.u32 %s143_s29, 4  ;;  %s152_s30 = int_to_ptr.vmem [resolvable:$true] %s151_s30 }
   0xd   : > { %s149_s4 = sshll.u32 %s148_s28, 4  ;;  %p960_p8 = pnand %p786_p6, %p943_p4  ;;  %s150_s4 = int_to_ptr.hbm [resolvable:$true] %s149_s4 }
   0xe   : > { %p772_p9 = scmp.ge.s32.totalorder %s885_s15, 1  ;;  %s140_s6 = scalar_lea.sflag [#allocation3], %s139_s23 }
   0xf   : > { %s821_s7 = sshra.s32 %s150_s4, 4  ;;  %p825_p11 = pneg %p960_p8  ;;  %s822_s7 = int_to_ptr.hbm [resolvable:$true] %s821_s7 }
  0x10   : > { %s823_s8 = scalar_lea.hbm %s822_s7, 64  ;;  %s828_s11 = scalar_lea.hbm %s1169_s0, 128 }
  0x11   : > { %p824_p10 = scmp.ne.s32.totalorder %s822_s7, %s823_s8  ;;  %p829_p0 = scmp.lt.s32.totalorder %s822_s7, %s1169_s0 }
  0x12   : > { %p830_p1 = scmp.lt.s32.totalorder %s828_s11, %s823_s8 }
  0x13   : > { %p826_p12 = pnand %p825_p11, %p824_p10 }
  0x14   : > { %p831_p2 = por %p830_p1, %p829_p0 }
  0x15   : > { %p827_p13 = pneg %p826_p12 }
  0x17   : > { %p832_p3 = pnand %p831_p2, %p827_p13 }
  0x19   : > { %835 = shalt.err (!%p832_p3)
}
  0x1a   : > { %s887_s19 = smov 128   ;;  %s888_s21 = smov 8  }
  0x1b   : > { %785 = dma.hbm_to_vmem [thread:$0]  (!%p960_p8), %s150_s4, 1024, %s152_s30, %s140_s6, %s887_s19, %s887_s19, %s888_s21  }
  0x1c   : > { %p159_p4 = scmp.lt.s32.totalorder %s885_s15, 3 }
  0x1e   : > { %p160_p5 = pnand %p772_p9, %p159_p4 }
  0x1f   : > { %s165_s23 = sand.u32 (!%p160_p5), 1, %s877_s13  }
  0x20   : > { %163 = sbr.rel (%p160_p5) target bundleno = 231 (0xe7), region = 24  ;;  %s773_s24 = sshll.u32 (!%p160_p5), %s165_s23, 6 }
  0x21   : > { %s166_s25 = scalar_lea.sflag (!%p160_p5), [#allocation3], %s165_s23  ;;  %s979_s26 = scalar_lea.vmem (!%p160_p5), [#allocation2], %s773_s24 }
  0x25   : > { %868 = dma.done.wait (%p949_p7), %s166_s25, 1024  }
  0x26   : > { %870 = vsyncadd (%p949_p7), %s166_s25, 4294966272  ;;  %vm270_vm0 = vcmask 125952   ;;  %v446_v0 = vld [vmem:[%s979_s26 + $0x4] sm:$0xf]  ;;  %v447_v1 = vld [vmem:[%s979_s26 + $0x14] sm:$0xf] }
  0x27   : > { %v448_v2 = vld [vmem:[%s979_s26 + $0x24] sm:$0xf]  ;;  %v449_v3 = vld [vmem:[%s979_s26 + $0x34] sm:$0xf]  ;;  %v450_v4 = vsel %vm270_vm0, %v446_v0, -inf  ;;  %v457_v5 = vsel %vm270_vm0, %v447_v1, -inf }
  0x28   : > { %v464_v6 = vsel %vm270_vm0, %v448_v2, -inf  ;;  %v451_v7 = vrot.slane %v450_v4, 4  ;;  %v458_v8 = vrot.slane %v457_v5, 4  ;;  %v471_v10 = vsel %vm270_vm0, %v449_v3, -inf  ;;  %v384_v11 = vld [vmem:[%s979_s26] sm:$0xf] }
  0x29   : > { %v465_v9 = vrot.slane %v464_v6, 4  ;;  %vm263_vm1 = vcmask 1041409   ;;  %v472_v12 = vrot.slane %v471_v10, 4  ;;  %v385_v13 = vld [vmem:[%s979_s26 + $0x10] sm:$0xf]  ;;  %v388_v15 = vsel %vm270_vm0, %v384_v11, -inf }
  0x2a   : > { %v386_v14 = vld [vmem:[%s979_s26 + $0x20] sm:$0xf]  ;;  %vm265_vm2 = vcmask 1042434   ;;  %v452_v16 = vmax.f32 %v450_v4, %v451_v7  ;;  %v459_v17 = vmax.f32 %v457_v5, %v458_v8  ;;  %v387_v19 = vld [vmem:[%s979_s26 + $0x30] sm:$0xf]  ;;  %v389_v20 = vrot.slane %v388_v15, 4 }
  0x2b   : > { %v466_v18 = vmax.f32 %v464_v6, %v465_v9  ;;  %vm267_vm3 = vcmask 1043459   ;;  %v473_v21 = vmax.f32 %v471_v10, %v472_v12  ;;  %v395_v22 = vsel %vm270_vm0, %v385_v13, -inf  ;;  %v510_v45 = vld [vmem:[%s979_s26 + $0x8] sm:$0xf]  ;;  %v511_v50 = vld [vmem:[%s979_s26 + $0x18] sm:$0xf] }
  0x2c   : > { %v402_v23 = vsel %vm270_vm0, %v386_v14, -inf  ;;  %v409_v24 = vsel %vm270_vm0, %v387_v19, -inf  ;;  %vm382_vm4 = vcmask 27648   ;;  %v453_v25 = vrot.slane %v452_v16, 2  ;;  %v512_v59 = vld [vmem:[%s979_s26 + $0x28] sm:$0xf] }
  0x2d   : > { %v460_v26 = vrot.slane %v459_v17, 2  ;;  %v467_v27 = vrot.slane %v466_v18, 2  ;;  %v390_v28 = vmax.f32 %v388_v15, %v389_v20  ;;  %v474_v29 = vrot.slane %v473_v21, 2  ;;  %v513_v5 = vld [vmem:[%s979_s26 + $0x38] sm:$0xf]  ;;  %p200_p6 = scmp.lt.s32.totalorder %s928_s16, 1 }
  0x2e   : > { %v396_v30 = vrot.slane %v395_v22, 4  ;;  %v403_v31 = vrot.slane %v402_v23, 4  ;;  %v410_v32 = vrot.slane %v409_v24, 4  ;;  %v454_v33 = vmax.f32 %v452_v16, %v453_v25  ;;  %v574_v16 = vld [vmem:[%s979_s26 + $0xc] sm:$0xf] }
  0x2f   : > { %v461_v34 = vmax.f32 %v459_v17, %v460_v26  ;;  %v468_v35 = vmax.f32 %v466_v18, %v467_v27  ;;  %v391_v36 = vrot.slane %v390_v28, 2  ;;  %vm428_vm5 = vcmask 60448   ;;  %v575_v17 = vld [vmem:[%s979_s26 + $0x1c] sm:$0xf]  ;;  %v576_v25 = vld [vmem:[%s979_s26 + $0x2c] sm:$0xf] }
  0x30   : > { %v475_v37 = vmax.f32 %v473_v21, %v474_v29  ;;  %v397_v38 = vmax.f32 %v395_v22, %v396_v30  ;;  %v404_v39 = vmax.f32 %v402_v23, %v403_v31  ;;  %v411_v40 = vmax.f32 %v409_v24, %v410_v32  ;;  %s1181_s16 = smov (!%p200_p6, %s928_s16), 1 }
  0x31   : > { %v455_v41 = vrot.slane %v454_v33, 1  ;;  %v462_v42 = vrot.slane %v461_v34, 1  ;;  %v469_v43 = vrot.slane %v468_v35, 1  ;;  %v392_v44 = vmax.f32 %v390_v28, %v391_v36  ;;  %v577_v28 = vld [vmem:[%s979_s26 + $0x3c] sm:$0xf]  ;;  %s774_s15 = sshll.u32 %s1181_s16, 2 }
  0x32   : > { %v476_v46 = vrot.slane %v475_v37, 1  ;;  %v398_v47 = vrot.slane %v397_v38, 2  ;;  %v405_v48 = vrot.slane %v404_v39, 2  ;;  %v412_v49 = vrot.slane %v411_v40, 2  ;;  %s203_s28 = scalar_lea.vmem %s1170_s1, %s774_s15  ;;  %s207_s30 = scalar_lea.vmem %s1171_s2, %s774_s15 }
  0x33   : > { %v456_v51 = vmax.f32 %v454_v33, %v455_v41  ;;  %v463_v52 = vmax.f32 %v461_v34, %v462_v42  ;;  %v470_v53 = vmax.f32 %v468_v35, %v469_v43  ;;  %v393_v54 = vrot.slane %v392_v44, 1  ;;  %s211_s6 = scalar_lea.vmem %s1172_s3, %s774_s15 }
  0x34   : > { %v477_v55 = vmax.f32 %v475_v37, %v476_v46  ;;  %v399_v56 = vmax.f32 %v397_v38, %v398_v47  ;;  %v406_v57 = vmax.f32 %v404_v39, %v405_v48  ;;  %v413_v58 = vmax.f32 %v411_v40, %v412_v49 }
  0x35   : > { %v482_v60 = vsel %vm263_vm1, %v463_v52, %v456_v51  ;;  %v394_v61 = vmax.f32 %v392_v44, %v393_v54  ;;  %v514_v62 = vsel %vm270_vm0, %v510_v45, -inf  ;;  %v521_v63 = vsel %vm270_vm0, %v511_v50, -inf }
  0x36   : > { %v483_v0 = vsel %vm265_vm2, %v470_v53, %v482_v60  ;;  %v400_v1 = vrot.slane %v399_v56, 1  ;;  %v407_v2 = vrot.slane %v406_v57, 1  ;;  %v414_v3 = vrot.slane %v413_v58, 1  ;;  %v279_v60 = vld [vmem:[%s979_s26 + $0x10] sm:$0xff] }
  0x37   : > { %v1009_v4 = vsel %vm267_vm3, %v477_v55, %v483_v0  ;;  %v515_v6 = vrot.slane %v514_v62, 4  ;;  %v522_v7 = vrot.slane %v521_v63, 4  ;;  %v528_v8 = vsel %vm270_vm0, %v512_v59, -inf  ;;  %v278_v59 = vld [vmem:[%s979_s26] sm:$0xff] }
  0x38   : > { %v486_v9 = vsel %vm382_vm4, %v1009_v4, -inf  ;;  %v401_v10 = vmax.f32 %v399_v56, %v400_v1  ;;  %v408_v11 = vmax.f32 %v406_v57, %v407_v2  ;;  %v415_v12 = vmax.f32 %v413_v58, %v414_v3 }
  0x39   : > { %487 = vmax.xlane.f32.xlu2 %v486_v9  ;;  %vm434_vm6 = vcmask 93248   ;;  %v516_v13 = vmax.f32 %v514_v62, %v515_v6  ;;  %v523_v14 = vmax.f32 %v521_v63, %v522_v7  ;;  %v529_v15 = vrot.slane %v528_v8, 4 }
  0x3a   : > { %v420_v18 = vsel %vm263_vm1, %v401_v10, %v394_v61  ;;  %v492_v19 = vsel %vm428_vm5, %v1009_v4, -inf  ;;  %vm440_vm7 = vcmask 126048   ;;  %v535_v20 = vsel %vm270_vm0, %v513_v5, -inf  ;;  %v280_v5 = vld [vmem:[%s979_s26 + $0x20] sm:$0xff] }
  0x3b   : > { %v421_v21 = vsel %vm265_vm2, %v408_v11, %v420_v18  ;;  %v517_v22 = vrot.slane %v516_v13, 2  ;;  %v524_v23 = vrot.slane %v523_v14, 2  ;;  %v530_v24 = vmax.f32 %v528_v8, %v529_v15  ;;  %v281_v15 = vld [vmem:[%s979_s26 + $0x30] sm:$0xff] }
  0x3c   : > { %v422_v26 = vsel %vm267_vm3, %v415_v12, %v421_v21  ;;  %v536_v27 = vrot.slane %v535_v20, 4  ;;  %v578_v29 = vsel %vm270_vm0, %v574_v16, -inf  ;;  %v585_v30 = vsel %vm270_vm0, %v575_v17, -inf }
  0x3d   : > { %v435_v31 = vsel %vm434_vm6, %v422_v26, -inf  ;;  %v424_v32 = vsel %vm382_vm4, %v422_v26, -inf  ;;  %v441_v33 = vsel %vm440_vm7, %v422_v26, -inf  ;;  %v429_v34 = vsel %vm428_vm5, %v422_v26, -inf }
  0x3e   : > { %436 = vmax.xlane.f32.xlu1 %v435_v31  ;;  %425 = vmax.xlane.f32.xlu0 %v424_v32  ;;  %v518_v35 = vmax.f32 %v516_v13, %v517_v22  ;;  %v525_v36 = vmax.f32 %v523_v14, %v524_v23  ;;  %v531_v37 = vrot.slane %v530_v24, 2  ;;  %v537_v38 = vmax.f32 %v535_v20, %v536_v27 }
  0x3f   : > { %v579_v39 = vrot.slane %v578_v29, 4  ;;  %v586_v40 = vrot.slane %v585_v30, 4  ;;  %v592_v41 = vsel %vm270_vm0, %v576_v25, -inf  ;;  %v599_v42 = vsel %vm270_vm0, %v577_v28, -inf }
  0x40   : > { %v519_v43 = vrot.slane %v518_v35, 1  ;;  %v526_v44 = vrot.slane %v525_v36, 1  ;;  %v532_v45 = vmax.f32 %v530_v24, %v531_v37  ;;  %v538_v46 = vrot.slane %v537_v38, 2 }
  0x41   : > { %493 = vmax.xlane.f32.xlu2 %v492_v19  ;;  %v580_v47 = vmax.f32 %v578_v29, %v579_v39  ;;  %v587_v48 = vmax.f32 %v585_v30, %v586_v40  ;;  %v593_v49 = vrot.slane %v592_v41, 4  ;;  %v600_v50 = vrot.slane %v599_v42, 4  ;;  %v330_v30 = vld [vmem:[%s979_s26 + $0x8] sm:$0xff] }
  0x42   : > { %v520_v51 = vmax.f32 %v518_v35, %v519_v43  ;;  %v527_v52 = vmax.f32 %v525_v36, %v526_v44  ;;  %v533_v53 = vrot.slane %v532_v45, 1  ;;  %v539_v54 = vmax.f32 %v537_v38, %v538_v46 }
  0x43   : > { %v581_v55 = vrot.slane %v580_v47, 2  ;;  %v588_v56 = vrot.slane %v587_v48, 2  ;;  %v594_v57 = vmax.f32 %v592_v41, %v593_v49  ;;  %v601_v58 = vmax.f32 %v599_v42, %v600_v50  ;;  %v331_v41 = vld [vmem:[%s979_s26 + $0x18] sm:$0xff] }
  0x44   : > { %v534_v61 = vmax.f32 %v532_v45, %v533_v53  ;;  %v540_v62 = vrot.slane %v539_v54, 1  ;;  %v546_v63 = vsel %vm263_vm1, %v527_v52, %v520_v51  ;;  %vm222_vm8 = vcmask 130048  }
  0x45   : > { %v582_v0 = vmax.f32 %v580_v47, %v581_v55  ;;  %v589_v1 = vmax.f32 %v587_v48, %v588_v56  ;;  %v595_v2 = vrot.slane %v594_v57, 2  ;;  %v602_v3 = vrot.slane %v601_v58, 2  ;;  %v332_v47 = vld [vmem:[%s979_s26 + $0x28] sm:$0xff] }
  0x46   : > { %442 = vmax.xlane.f32.xlu1 %v441_v33  ;;  %430 = vmax.xlane.f32.xlu0 %v429_v34  ;;  %v541_v6 = vmax.f32 %v539_v54, %v540_v62  ;;  %v547_v7 = vsel %vm265_vm2, %v534_v61, %v546_v63  ;;  %v1039_v8 = vsel %vm222_vm8, %v278_v59, -inf  ;;  %v1042_v9 = vsel %vm222_vm8, %v279_v60, -inf  ;;  %v333_v54 = vld [vmem:[%s979_s26 + $0x38] sm:$0xff] }
  0x47   : > { %v583_v10 = vrot.slane %v582_v0, 1  ;;  %v590_v11 = vrot.slane %v589_v1, 1  ;;  %v596_v12 = vmax.f32 %v594_v57, %v595_v2  ;;  %v603_v13 = vmax.f32 %v601_v58, %v602_v3 }
  0x48   : > { %v548_v14 = vsel %vm267_vm3, %v541_v6, %v547_v7  ;;  %v283_v16 = vrot.slane %v1039_v8, 4  ;;  %v290_v17 = vrot.slane %v1042_v9, 4  ;;  %v1049_v18 = vsel %vm222_vm8, %v280_v5, -inf }
  0x49   : > { %v550_v19 = vsel %vm382_vm4, %v548_v14, -inf  ;;  %v504_v20 = vsel %vm440_vm7, %v1009_v4, -inf  ;;  %v498_v21 = vsel %vm434_vm6, %v1009_v4, -inf  ;;  %v584_v22 = vmax.f32 %v582_v0, %v583_v10 }
  0x4a   : > { %551 = vmax.xlane.f32.xlu2 %v550_v19  ;;  %v591_v23 = vmax.f32 %v589_v1, %v590_v11  ;;  %v597_v24 = vrot.slane %v596_v12, 1  ;;  %v604_v25 = vrot.slane %v603_v13, 1  ;;  %v284_v26 = vmax.f32 %v1039_v8, %v283_v16 }
  0x4b   : > { %v291_v27 = vmax.f32 %v1042_v9, %v290_v17  ;;  %v297_v28 = vrot.slane %v1049_v18, 4  ;;  %v1060_v29 = vsel %vm222_vm8, %v281_v15, -inf  ;;  %v568_v34 = vsel %vm440_vm7, %v548_v14, -inf }
  0x4c   : > { %v598_v31 = vmax.f32 %v596_v12, %v597_v24  ;;  %v605_v32 = vmax.f32 %v603_v13, %v604_v25  ;;  %v610_v4 = vsel %vm263_vm1, %v591_v23, %v584_v22  ;;  %v304_v33 = vrot.slane %v1060_v29, 4 }
  0x4d   : > { %v285_v35 = vrot.slane %v284_v26, 2  ;;  %v292_v36 = vrot.slane %v291_v27, 2  ;;  %v298_v37 = vmax.f32 %v1049_v18, %v297_v28  ;;  %v562_v38 = vsel %vm434_vm6, %v548_v14, -inf }
  0x4e   : > { %505 = vmax.xlane.f32.xlu1 %v504_v20  ;;  %499 = vmax.xlane.f32.xlu0 %v498_v21  ;;  %v611_v39 = vsel %vm265_vm2, %v598_v31, %v610_v4  ;;  %v305_v40 = vmax.f32 %v1060_v29, %v304_v33  ;;  %v334_v42 = vsel %vm222_vm8, %v330_v30, -inf  ;;  %v556_v43 = vsel %vm428_vm5, %v548_v14, -inf }
  0x4f   : > { %v286_v44 = vmax.f32 %v284_v26, %v285_v35  ;;  %v293_v45 = vmax.f32 %v291_v27, %v292_v36  ;;  %v299_v46 = vrot.slane %v298_v37, 2  ;;  %v1075_v48 = vsel %vm267_vm3, %v605_v32, %v611_v39 }
  0x50   : > { %v306_v49 = vrot.slane %v305_v40, 2  ;;  %vm323_vm9 = vcmask 126016   ;;  %v335_v50 = vrot.slane %v334_v42, 4  ;;  %v341_v55 = vsel %vm222_vm8, %v331_v41, -inf }
  0x51   : > { %v287_v51 = vrot.slane %v286_v44, 1  ;;  %v294_v52 = vrot.slane %v293_v45, 1  ;;  %v300_v53 = vmax.f32 %v298_v37, %v299_v46  ;;  %v342_v58 = vrot.slane %v341_v55, 4 }
  0x52   : > { %569 = vmax.xlane.f32.xlu2 %v568_v34  ;;  %v307_v56 = vmax.f32 %v305_v40, %v306_v49  ;;  %v336_v57 = vmax.f32 %v334_v42, %v335_v50  ;;  %v348_v59 = vsel %vm222_vm8, %v332_v47, -inf  ;;  %v355_v3 = vsel %vm222_vm8, %v333_v54, -inf }
  0x53   : > { %v288_v60 = vmax.f32 %v286_v44, %v287_v51  ;;  %v295_v61 = vmax.f32 %v293_v45, %v294_v52  ;;  %v301_v62 = vrot.slane %v300_v53, 1  ;;  %v349_v63 = vrot.slane %v348_v59, 4 }
  0x54   : > { %v308_v0 = vrot.slane %v307_v56, 1  ;;  %v337_v1 = vrot.slane %v336_v57, 2  ;;  %v343_v2 = vmax.f32 %v341_v55, %v342_v58  ;;  %v356_v10 = vrot.slane %v355_v3, 4 }
  0x55   : > { %v302_v5 = vmax.f32 %v300_v53, %v301_v62  ;;  %v314_v6 = vsel %vm263_vm1, %v295_v61, %v288_v60  ;;  %v350_v7 = vmax.f32 %v348_v59, %v349_v63  ;;  %vm318_vm10 = vcmask 60416  }
  0x56   : > { %563 = vmax.xlane.f32.xlu1 %v562_v38  ;;  %557 = vmax.xlane.f32.xlu0 %v556_v43  ;;  %v309_v11 = vmax.f32 %v307_v56, %v308_v0  ;;  %v338_v12 = vmax.f32 %v336_v57, %v337_v1  ;;  %v344_v13 = vrot.slane %v343_v2, 2  ;;  %v614_v14 = vsel %vm382_vm4, %v1075_v48, -inf }
  0x57   : > { %v315_v15 = vsel %vm265_vm2, %v302_v5, %v314_v6  ;;  %v351_v16 = vrot.slane %v350_v7, 2  ;;  %v357_v17 = vmax.f32 %v355_v3, %v356_v10  ;;  %v225_v22 = vmax.f32 %v1039_v8, %v334_v42 }
  0x58   : > { %v316_v19 = vsel %vm267_vm3, %v309_v11, %v315_v15  ;;  %v339_v20 = vrot.slane %v338_v12, 1  ;;  %v345_v21 = vmax.f32 %v343_v2, %v344_v13  ;;  %v234_v31 = vmax.f32 %v1042_v9, %v341_v55 }
  0x59   : > { %v324_v23 = vsel %vm323_vm9, %v316_v19, -inf  ;;  %v319_v24 = vsel %vm318_vm10, %v316_v19, -inf  ;;  %v352_v25 = vmax.f32 %v350_v7, %v351_v16  ;;  %v358_v26 = vrot.slane %v357_v17, 2 }
  0x5a   : > { %325 = vmax.xlane.f32.xlu2 %v324_v23  ;;  %v340_v27 = vmax.f32 %v338_v12, %v339_v20  ;;  %v346_v28 = vrot.slane %v345_v21, 1  ;;  %v226_v30 = vrot.slane %v225_v22, 4  ;;  %v243_v33 = vmax.f32 %v1049_v18, %v348_v59 }
  0x5b   : > { %v353_v32 = vrot.slane %v352_v25, 1  ;;  %v359_v4 = vmax.f32 %v357_v17, %v358_v26  ;;  %v252_v34 = vmax.f32 %v1060_v29, %v355_v3  ;;  %v235_v36 = vrot.slane %v234_v31, 4 }
  0x5c   : > { %v347_v35 = vmax.f32 %v345_v21, %v346_v28  ;;  %v227_v8 = vmax.f32 %v225_v22, %v226_v30  ;;  %v244_v39 = vrot.slane %v243_v33, 4  ;;  %v626_v9 = vsel %vm434_vm6, %v1075_v48, -inf }
  0x5d   : > { %v354_v37 = vmax.f32 %v352_v25, %v353_v32  ;;  %v360_v38 = vrot.slane %v359_v4, 1  ;;  %v253_v40 = vrot.slane %v252_v34, 4  ;;  %v236_v43 = vmax.f32 %v234_v31, %v235_v36 }
  0x5e   : > { %615 = vmax.xlane.f32.xlu0 %v614_v14  ;;  %320 = vmax.xlane.f32.xlu1 %v319_v24  ;;  %v366_v41 = vsel %vm263_vm1, %v347_v35, %v340_v27  ;;  %v228_v42 = vrot.slane %v227_v8, 2  ;;  %v245_v29 = vmax.f32 %v243_v33, %v244_v39  ;;  %v620_v54 = vsel %vm428_vm5, %v1075_v48, -inf }
  0x5f   : > { %v361_v44 = vmax.f32 %v359_v4, %v360_v38  ;;  %v367_v18 = vsel %vm265_vm2, %v354_v37, %v366_v41  ;;  %v254_v45 = vmax.f32 %v252_v34, %v253_v40  ;;  %v237_v47 = vrot.slane %v236_v43, 2 }
  0x60   : > { %v229_v46 = vmax.f32 %v227_v8, %v228_v42  ;;  %v246_v50 = vrot.slane %v245_v29, 2  ;;  %v632_v6 = vsel %vm440_vm7, %v1075_v48, -inf  ;;  %v212_v11 = vlaneseq }
  0x61   : > { %v368_v49 = vsel %vm267_vm3, %v361_v44, %v367_v18  ;;  %v255_v51 = vrot.slane %v254_v45, 2  ;;  %v238_v53 = vmax.f32 %v236_v43, %v237_v47 }
  0x62   : > { %627 = vmax.xlane.f32.xlu2 %v626_v9  ;;  %v230_v52 = vrot.slane %v229_v46, 1  ;;  %v370_v55 = vsel %vm318_vm10, %v368_v49, -inf  ;;  %v247_v56 = vmax.f32 %v245_v29, %v246_v50  ;;  %v376_v5 = vsel %vm323_vm9, %v368_v49, -inf }
  0x63   : > { %v256_v57 = vmax.f32 %v254_v45, %v255_v51  ;;  %v239_v59 = vrot.slane %v238_v53, 1  ;;  %v1107_v14 = vand.u32 127, %v212_v11 }
  0x64   : > { %v231_v58 = vmax.f32 %v229_v46, %v230_v52  ;;  %v248_v60 = vrot.slane %v247_v56, 1 }
  0x65   : > { %v257_v61 = vrot.slane %v256_v57, 1  ;;  %v240_v62 = vmax.f32 %v238_v53, %v239_v59  ;;  %vm274_vm11 = vcmp.eq.s32.totalorder %v1107_v14, 0  ;;  %vm327_vm12 = vcmp.eq.s32.totalorder %v1107_v14, 1 }
  0x66   : > { %621 = vmax.xlane.f32.xlu0 %v620_v54  ;;  %371 = vmax.xlane.f32.xlu1 %v370_v55  ;;  %v249_v63 = vmax.f32 %v247_v56, %v248_v60  ;;  %vm373_vm13 = vcmp.eq.s32.totalorder %v1107_v14, 2  ;;  %vm379_vm14 = vcmp.eq.s32.totalorder %v1107_v14, 3  ;;  %vm489_vm15 = vcmp.eq.s32.totalorder %v1107_v14, 4 }
  0x67   : > { %v258_v0 = vmax.f32 %v256_v57, %v257_v61  ;;  %v264_v1 = vsel %vm263_vm1, %v240_v62, %v231_v58  ;;  %vm495_vm1 = vcmp.eq.s32.totalorder %v1107_v14, 5  ;;  %vm553_vm5 = vcmp.eq.s32.totalorder %v1107_v14, 8 }
  0x68   : > { %v266_v2 = vsel %vm265_vm2, %v249_v63, %v264_v1  ;;  %vm501_vm2 = vcmp.eq.s32.totalorder %v1107_v14, 6  ;;  %vm559_vm6 = vcmp.eq.s32.totalorder %v1107_v14, 9  ;;  %vm565_vm7 = vcmp.eq.s32.totalorder %v1107_v14, 10 }
  0x69   : > { %v268_v3 = vsel %vm267_vm3, %v258_v0, %v266_v2  ;;  %vm507_vm3 = vcmp.eq.s32.totalorder %v1107_v14, 7  ;;  %vm571_vm8 = vcmp.eq.s32.totalorder %v1107_v14, 11  ;;  %vm617_vm9 = vcmp.eq.s32.totalorder %v1107_v14, 12 }
  0x6a   : > { %v271_v7 = vsel %vm270_vm0, %v268_v3, -inf  ;;  %vm623_vm10 = vcmp.eq.s32.totalorder %v1107_v14, 13 }
  0x6b   : > { %272 = vmax.xlane.f32.xlu2 %v271_v7 }
  0x6e   : > { %377 = vmax.xlane.f32.xlu0 %v376_v5  ;;  %633 = vmax.xlane.f32.xlu1 %v632_v6 }
  0xac   : > { %v488_v10 = vpop.xlane.xlu2 %487 }
  0xad   : > { %v490_v26 = vsel %vm489_vm15, %v488_v10, -inf  ;;  %vm629_vm15 = vcmp.eq.s32.totalorder %v1107_v14, 14 }
  0xb1   : > { %v437_v12 = vpop.xlane.xlu1 %436  ;;  %v426_v13 = vpop.xlane.xlu0 %425 }
  0xb2   : > { %v427_v17 = vsel %vm274_vm11, %v426_v13, -inf  ;;  %v438_v21 = vsel %vm373_vm13, %v437_v12, -inf }
  0xb4   : > { %v494_v15 = vpop.xlane.xlu2 %493 }
  0xb5   : > { %v496_v31 = vsel %vm495_vm1, %v494_v15, -inf  ;;  %vm276_vm1 = vcmask 3072  }
  0xb9   : > { %v443_v16 = vpop.xlane.xlu1 %442  ;;  %v431_v48 = vpop.xlane.xlu0 %430 }
  0xba   : > { %v432_v19 = vsel %vm327_vm12, %v431_v48, -inf  ;;  %v444_v24 = vsel %vm379_vm14, %v443_v16, -inf }
  0xbb   : > { %v433_v20 = vmax.f32 %v427_v17, %v432_v19 }
  0xbd   : > { %v439_v22 = vmax.f32 %v433_v20, %v438_v21  ;;  %v552_v23 = vpop.xlane.xlu2 %551 }
  0xbe   : > { %v554_v38 = vsel %vm553_vm5, %v552_v23, -inf }
  0xbf   : > { %v445_v25 = vmax.f32 %v439_v22, %v444_v24 }
  0xc1   : > { %v506_v27 = vpop.xlane.xlu1 %505  ;;  %v491_v28 = vmax.f32 %v445_v25, %v490_v26  ;;  %v500_v30 = vpop.xlane.xlu0 %499 }
  0xc2   : > { %v502_v4 = vsel %vm501_vm2, %v500_v30, -inf  ;;  %v508_v35 = vsel %vm507_vm3, %v506_v27, -inf  ;;  %vm635_vm2 = vcmp.eq.s32.totalorder %v1107_v14, 15 }
  0xc3   : > { %v497_v32 = vmax.f32 %v491_v28, %v496_v31 }
  0xc5   : > { %v503_v33 = vmax.f32 %v497_v32, %v502_v4  ;;  %v570_v34 = vpop.xlane.xlu2 %569 }
  0xc6   : > { %v572_v45 = vsel %vm571_vm8, %v570_v34, -inf }
  0xc7   : > { %v509_v8 = vmax.f32 %v503_v33, %v508_v35 }
  0xc9   : > { %v564_v36 = vpop.xlane.xlu1 %563  ;;  %v558_v37 = vpop.xlane.xlu0 %557  ;;  %v555_v39 = vmax.f32 %v509_v8, %v554_v38 }
  0xca   : > { %v560_v41 = vsel %vm559_vm6, %v558_v37, -inf  ;;  %v566_v44 = vsel %vm565_vm7, %v564_v36, -inf }
  0xcb   : > { %v561_v9 = vmax.f32 %v555_v39, %v560_v41 }
  0xcd   : > { %v326_v40 = vpop.xlane.xlu2 %325  ;;  %v567_v18 = vmax.f32 %v561_v9, %v566_v44 }
  0xce   : > { %v328_v53 = vsel %vm327_vm12, %v326_v40, -inf }
  0xcf   : > { %v573_v47 = vmax.f32 %v567_v18, %v572_v45 }
  0xd1   : > { %v616_v42 = vpop.xlane.xlu0 %615  ;;  %v321_v43 = vpop.xlane.xlu1 %320 }
  0xd2   : > { %v618_v46 = vsel %vm617_vm9, %v616_v42, -inf  ;;  %v322_v54 = vsel %vm274_vm11, %v321_v43, -inf }
  0xd3   : > { %v619_v52 = vmax.f32 %v573_v47, %v618_v46  ;;  %v329_v58 = vmax.f32 %v322_v54, %v328_v53 }
  0xd5   : > { %v628_v29 = vpop.xlane.xlu2 %627 }
  0xd6   : > { %v630_v57 = vsel %vm629_vm15, %v628_v29, -inf }
  0xd9   : > { %v622_v49 = vpop.xlane.xlu0 %621  ;;  %v372_v50 = vpop.xlane.xlu1 %371 }
  0xda   : > { %v624_v51 = vsel %vm623_vm10, %v622_v49, -inf  ;;  %v374_v56 = vsel %vm373_vm13, %v372_v50, -inf }
  0xdb   : > { %v625_v55 = vmax.f32 %v619_v52, %v624_v51  ;;  %v375_v61 = vmax.f32 %v329_v58, %v374_v56 }
  0xdd   : > { %v631_v62 = vmax.f32 %v625_v55, %v630_v57 }
  0xde   : > { %v273_v59 = vpop.xlane.xlu2 %272 }
  0xdf   : > { %v275_v60 = vsel %vm274_vm11, %v273_v59, -inf }
  0xe0   : > { %277 = vst.msk [vmem:[%s203_s28] sm:$0xf] %vm276_vm1, %v275_v60 }
  0xe1   : > { %v378_v63 = vpop.xlane.xlu0 %377  ;;  %v634_v0 = vpop.xlane.xlu1 %633 }
  0xe2   : > { %v380_v1 = vsel %vm379_vm14, %v378_v63, -inf  ;;  %v636_v2 = vsel %vm635_vm2, %v634_v0, -inf }
  0xe3   : > { %v381_v3 = vmax.f32 %v375_v61, %v380_v1  ;;  %v637_v5 = vmax.f32 %v631_v62, %v636_v2 }
  0xe5   : > { %383 = vst.msk [vmem:[%s207_s30] sm:$0xf] %vm382_vm4, %v381_v3 }
  0xe6   : > { %638 = vst.msk [vmem:[%s211_s6] sm:$0xf] %vm270_vm0, %v637_v5 }
  0xe7 PF: > { %p14_p7 = scmp.ge.s32.totalorder %s931_s17, 4   ;;  %s1176_s12 = smov %s877_s13 }
  0xe8   : > { %s1177_s13 = smov %s881_s14  ;;  %s1178_s14 = smov %s941_s20 }
  0xe9   : > { %s1179_s15 = smov %s931_s17  ;;  %16 = sbr.rel (!%p14_p7) target bundleno = 3 (0x3), region = 88 }
  0xee   :  { %686 = vsyncpa [#allocation3], 1 }
  0xef   :  { %688 = vsyncpa [#allocation3 + $0x1], 1 }

</bundles_post_ra>
